<compile_context>
chip_gen: v5e
topology: v5e:2x2
jax: 0.10.0
libtpu: 0.0.40
codegen_flags: <defaults>
</compile_context>

<pallas_src>
import functools

import jax
import jax.numpy as jnp
from jax import lax
from jax.experimental import pallas as pl
from jax.experimental.pallas import tpu as pltpu

# Hyper-parameters fixed by newNet / SpecialBlock2 (block_low path).
LOW_K = 3                         # conv kernel height
KW = 8                            # conv kernel width
STRIDE_H = LOW_K // 2             # int(3/2) = 1
PAD_H = round(LOW_K / 4 + 0.5)    # round(1.25) = 1
POOL_H = 6                        # MaxPool2d((6, 1))
ADAPT_H = 4                       # AdaptiveAvgPool2d((4, 1))
NUM_CLASSES = 7
Q_PAD = 128                       # class dim padded to one full lane set
BN_EPS = 1e-5

# bf16 matmul operands are MXU-native on v6e/v7x; set to jnp.float32 for
# bit-accurate f32 math.
MATMUL_DTYPE = jnp.bfloat16


def _newnet_kernel(p_ref, w_ref, shift_ref, v_ref, b_ref, o_ref, *,
                   n, h_pool, w_out, pool_h):
    # p_ref     : (M, K)               im2col patches, rows ordered (j, w, g, n)
    # w_ref     : (K, C)               conv weight with BN scale folded in
    # shift_ref : (1, C)               folded BN shift
    # v_ref     : (H_pool, C, Q_PAD)   fc weight, adaptive-pool/flatten folded in
    # b_ref     : (1, Q_PAD)           fc bias (zero-padded)
    # o_ref     : (N, Q_PAD)           lane-dense padded logits
    # Conv as one MXU matmul over the fused (batch*h*w) M axis, f32 accumulate.
    conv = jnp.dot(p_ref[...], w_ref[...], preferred_element_type=jnp.float32)
    y = jnp.maximum(conv + shift_ref[...], 0.0)               # BN shift + ReLU

    # MaxPool2d((6,1)): the in-window index j is the OUTERMOST row index, so
    # the pool reduces over pool_h contiguous, sublane-aligned slices.
    blk = w_out * h_pool * n
    m = y[0:blk, :]
    for j in range(1, pool_h):
        m = jnp.maximum(m, y[j * blk:(j + 1) * blk, :])       # rows now (w, g, n)

    # AdaptiveAvgPool W-average: sum w_out aligned slices; the 1/W_out factor
    # (and the adaptive-H averaging) is folded into v_ref.
    grp = h_pool * n
    s = m[0:grp, :]
    for w in range(1, w_out):
        s = s + m[w * grp:(w + 1) * grp, :]                   # rows now (g, n)

    # Adaptive H-pool + flatten + Linear, as per-g accumulated matmuls into a
    # lane-dense (N, Q_PAD) accumulator.
    acc = jnp.zeros(o_ref.shape, jnp.float32)
    for g in range(h_pool):
        acc = acc + jnp.dot(s[g * n:(g + 1) * n, :], v_ref[g],
                            preferred_element_type=jnp.float32)
    o_ref[...] = (acc + b_ref[...]).astype(o_ref.dtype)


def newnet_forward(x, conv_w, bn_gamma, bn_beta, bn_mean, bn_var, fc_w, fc_b):
    """newNet.forward.  x: (N, 1, H, W) f32 -> logits (N, 7) f32."""
    N, C_in, H, W = x.shape
    C_out = conv_w.shape[0]
    H_out = (H + 2 * PAD_H - LOW_K) // STRIDE_H + 1
    W_out = W - KW + 1
    assert W_out >= 1
    # MaxPool2d floors: trailing H_out % 6 conv rows are dropped (we never
    # build patches for them).
    H_pool = H_out // POOL_H
    assert H_pool >= 1
    # TODO(synk): AdaptiveAvgPool2d((4,1)) with H_pool not divisible by 4 uses
    # uneven windows; only the evenly-divisible case is implemented here.
    assert H_pool % ADAPT_H == 0, "H_pool must be a multiple of 4"
    r = H_pool // ADAPT_H
    H_used = H_pool * POOL_H
    K = C_in * LOW_K * KW
    M = POOL_H * W_out * H_pool * N

    # --- im2col (pure data rearrangement), batch fused into M.
    #     Row order (j, w, g, n): pool index j outermost -> aligned reductions.
    x_pad = jnp.pad(x, ((0, 0), (0, 0), (PAD_H, PAD_H), (0, 0)))
    taps = [x_pad[:, :, kh:kh + H_used, kw:kw + W_out]
            for kh in range(LOW_K) for kw in range(KW)]
    p = jnp.stack(taps, axis=-1)                         # (N, Ci, H_used, Wo, 24)
    p = p.reshape(N, C_in, H_pool, POOL_H, W_out, LOW_K * KW)
    p = p.transpose(3, 4, 2, 0, 1, 5)                    # (j, w, g, n, ci, khw)
    patches = p.reshape(M, K).astype(MATMUL_DTYPE)

    # Conv weight (C_out, C_in, KH, KW) -> (K, C_out) with BN scale folded in.
    # TODO(synk): BN is folded as an inference-mode affine (running stats);
    # PyTorch's default train-mode BatchNorm2d would use batch statistics.
    scale = (bn_gamma / jnp.sqrt(bn_var + BN_EPS)).astype(jnp.float32)
    shift = (bn_beta - bn_mean * scale).astype(jnp.float32).reshape(1, C_out)
    w_mat = conv_w.transpose(1, 2, 3, 0).reshape(K, C_out).astype(jnp.float32)
    w_mat = (w_mat * scale[None, :]).astype(MATMUL_DTYPE)

    # fc weight with AdaptiveAvgPool2d((4,1)) + flatten (c*4+p order) folded in:
    #   v[g, c, q] = fc_w[q, c*4 + g//r] / (r * W_out)
    # padded along q to Q_PAD lanes so the kernel's fc matmul / final store
    # are lane-dense (unmasked vst).
    fc_w_cp = fc_w.reshape(NUM_CLASSES, C_out, ADAPT_H)
    p_of_g = jnp.arange(H_pool) // r
    v = jnp.transpose(fc_w_cp[:, :, p_of_g], (2, 1, 0))
    v = (v / (r * W_out)).astype(jnp.float32)            # (H_pool, C_out, 7)
    v = jnp.pad(v, ((0, 0), (0, 0), (0, Q_PAD - NUM_CLASSES)))
    bias = jnp.pad(fc_b.reshape(1, NUM_CLASSES).astype(jnp.float32),
                   ((0, 0), (0, Q_PAD - NUM_CLASSES)))

    kernel = functools.partial(_newnet_kernel, n=N, h_pool=H_pool,
                               w_out=W_out, pool_h=POOL_H)
    out_padded = pl.pallas_call(
        kernel,
        out_shape=jax.ShapeDtypeStruct((N, Q_PAD), jnp.float32),
        grid=(1,),   # batch fused into M; at scale, tile M with a parallel axis
        in_specs=[
            pl.BlockSpec((M, K), lambda i: (0, 0)),
            pl.BlockSpec((K, C_out), lambda i: (0, 0)),
            pl.BlockSpec((1, C_out), lambda i: (0, 0)),
            pl.BlockSpec((H_pool, C_out, Q_PAD), lambda i: (0, 0, 0)),
            pl.BlockSpec((1, Q_PAD), lambda i: (0, 0)),
        ],
        out_specs=pl.BlockSpec((N, Q_PAD), lambda i: (0, 0)),
        compiler_params=pltpu.CompilerParams(
            dimension_semantics=("arbitrary",)),
    )(patches, w_mat, shift, v, bias)
    return out_padded[:, :NUM_CLASSES]


def _reference(x, conv_w, bn_gamma, bn_beta, bn_mean, bn_var, fc_w, fc_b):
    conv = lax.conv_general_dilated(
        x, conv_w, window_strides=(STRIDE_H, 1),
        padding=((PAD_H, PAD_H), (0, 0)),
        dimension_numbers=("NCHW", "OIHW", "NCHW"))
    scale = bn_gamma / jnp.sqrt(bn_var + BN_EPS)
    shift = bn_beta - bn_mean * scale
    y = jnp.maximum(conv * scale[None, :, None, None]
                    + shift[None, :, None, None], 0.0)
    mp = lax.reduce_window(y, -jnp.inf, lax.max,
                           window_dimensions=(1, 1, POOL_H, 1),
                           window_strides=(1, 1, POOL_H, 1), padding="VALID")
    n_, c_, hp, wp = mp.shape
    r = hp // ADAPT_H
    ap = mp.reshape(n_, c_, ADAPT_H, r, wp).mean(axis=(3, 4))   # (N, C, 4)
    feat = ap.reshape(n_, c_ * ADAPT_H)                          # c-major flatten
    return feat @ fc_w.T + fc_b[None, :]


if __name__ == "__main__":
    key = jax.random.PRNGKey(0)
    k_x, k_w, k_fw, k_fb = jax.random.split(key, 4)

    # newNet: input (N, 1, H, W); H chosen so H_pool = H // 6 is a multiple of 4.
    N, C_in, H, W = 2, 1, 24, 16
    C_out = 64                      # newNet.outc

    x = jax.random.normal(k_x, (N, C_in, H, W), dtype=jnp.float32)
    conv_w = (jax.random.normal(k_w, (C_out, C_in, LOW_K, KW), jnp.float32)
              * (1.0 / (C_in * LOW_K * KW) ** 0.5))
    # BatchNorm2d default parameters / running stats
    bn_gamma = jnp.ones((C_out,), jnp.float32)
    bn_beta = jnp.zeros((C_out,), jnp.float32)
    bn_mean = jnp.zeros((C_out,), jnp.float32)
    bn_var = jnp.ones((C_out,), jnp.float32)
    # Linear(64*4, 7)
    fc_w = (jax.random.normal(k_fw, (NUM_CLASSES, C_out * ADAPT_H), jnp.float32)
            * (1.0 / (C_out * ADAPT_H) ** 0.5))
    fc_b = jax.random.normal(k_fb, (NUM_CLASSES,), jnp.float32) * 0.05

    out = newnet_forward(x, conv_w, bn_gamma, bn_beta, bn_mean, bn_var,
                         fc_w, fc_b)
    out = jax.block_until_ready(out)

    ref = _reference(x, conv_w, bn_gamma, bn_beta, bn_mean, bn_var, fc_w, fc_b)
    assert out.shape == ref.shape == (N, NUM_CLASSES), (out.shape, ref.shape)
    # bf16 matmul operands -> loose tolerance vs the f32 reference.
    assert jnp.allclose(out, ref, atol=3e-2, rtol=3e-2), (
        "mismatch vs reference", float(jnp.max(jnp.abs(out - ref))))

    print("KERNEL_OK")
</pallas_src>

<mosaic_0001>
module attributes {stable_mosaic.version = 11 : i64} {
  func.func @_newnet_kernel(%arg0: i32, %arg1: memref<432x24xbf16, #tpu.memory_space<vmem>>, %arg2: memref<24x64xbf16, #tpu.memory_space<vmem>>, %arg3: memref<1x64xf32, #tpu.memory_space<vmem>>, %arg4: memref<4x64x128xf32, #tpu.memory_space<vmem>>, %arg5: memref<1x128xf32, #tpu.memory_space<vmem>>, %arg6: memref<2x128xf32, #tpu.memory_space<vmem>>) attributes {dimension_semantics = [#tpu.dimension_semantics<arbitrary>], iteration_bounds = array<i64: 1>, scalar_prefetch = 0 : i64, scratch_operands = 0 : i64, tpu.core_type = #tpu.core_type<tc>, window_params = [{pipeline_mode = #tpu.pipeline_mode<synchronous>, transform_indices = @transform_0, window_bounds = array<i64: 432, 24>}, {pipeline_mode = #tpu.pipeline_mode<synchronous>, transform_indices = @transform_1, window_bounds = array<i64: 24, 64>}, {pipeline_mode = #tpu.pipeline_mode<synchronous>, transform_indices = @transform_2, window_bounds = array<i64: 1, 64>}, {pipeline_mode = #tpu.pipeline_mode<synchronous>, transform_indices = @transform_3, window_bounds = array<i64: 4, 64, 128>}, {pipeline_mode = #tpu.pipeline_mode<synchronous>, transform_indices = @transform_4, window_bounds = array<i64: 1, 128>}, {pipeline_mode = #tpu.pipeline_mode<synchronous>, transform_indices = @transform_5, window_bounds = array<i64: 2, 128>}]} {
    %c0 = arith.constant 0 : index
    %c0_0 = arith.constant 0 : index
    %0 = vector.load %arg1[%c0, %c0_0] : memref<432x24xbf16, #tpu.memory_space<vmem>>, vector<432x24xbf16>
    %c0_1 = arith.constant 0 : index
    %c0_2 = arith.constant 0 : index
    %1 = vector.load %arg2[%c0_1, %c0_2] : memref<24x64xbf16, #tpu.memory_space<vmem>>, vector<24x64xbf16>
    %cst = arith.constant dense<0.000000e+00> : vector<432x64xf32>
    %2 = tpu.matmul %0, %1, %cst {dimension_numbers = #tpu.dot_dimension_numbers<[1], [0], [0], [1], [0, 0, 1, 1], [], []>} : vector<432x24xbf16>, vector<24x64xbf16>, vector<432x64xf32> -> vector<432x64xf32>
    %c0_3 = arith.constant 0 : index
    %c0_4 = arith.constant 0 : index
    %3 = vector.load %arg3[%c0_3, %c0_4] : memref<1x64xf32, #tpu.memory_space<vmem>>, vector<1x64xf32>
    %4 = vector.broadcast %3 : vector<1x64xf32> to vector<432x64xf32>
    %5 = arith.addf %2, %4 : vector<432x64xf32>
    %cst_5 = arith.constant 0.000000e+00 : f32
    %6 = vector.broadcast %cst_5 : f32 to vector<432x64xf32>
    %7 = arith.maximumf %5, %6 : vector<432x64xf32>
    %8 = vector.extract_strided_slice %7 {offsets = [0, 0], sizes = [72, 64], strides = [1, 1]} : vector<432x64xf32> to vector<72x64xf32>
    %9 = vector.extract_strided_slice %7 {offsets = [72, 0], sizes = [72, 64], strides = [1, 1]} : vector<432x64xf32> to vector<72x64xf32>
    %10 = arith.maximumf %8, %9 : vector<72x64xf32>
    %11 = vector.extract_strided_slice %7 {offsets = [144, 0], sizes = [72, 64], strides = [1, 1]} : vector<432x64xf32> to vector<72x64xf32>
    %12 = arith.maximumf %10, %11 : vector<72x64xf32>
    %13 = vector.extract_strided_slice %7 {offsets = [216, 0], sizes = [72, 64], strides = [1, 1]} : vector<432x64xf32> to vector<72x64xf32>
    %14 = arith.maximumf %12, %13 : vector<72x64xf32>
    %15 = vector.extract_strided_slice %7 {offsets = [288, 0], sizes = [72, 64], strides = [1, 1]} : vector<432x64xf32> to vector<72x64xf32>
    %16 = arith.maximumf %14, %15 : vector<72x64xf32>
    %17 = vector.extract_strided_slice %7 {offsets = [360, 0], sizes = [72, 64], strides = [1, 1]} : vector<432x64xf32> to vector<72x64xf32>
    %18 = arith.maximumf %16, %17 : vector<72x64xf32>
    %19 = vector.extract_strided_slice %18 {offsets = [0, 0], sizes = [8, 64], strides = [1, 1]} : vector<72x64xf32> to vector<8x64xf32>
    %20 = vector.extract_strided_slice %18 {offsets = [8, 0], sizes = [8, 64], strides = [1, 1]} : vector<72x64xf32> to vector<8x64xf32>
    %21 = arith.addf %19, %20 : vector<8x64xf32>
    %22 = vector.extract_strided_slice %18 {offsets = [16, 0], sizes = [8, 64], strides = [1, 1]} : vector<72x64xf32> to vector<8x64xf32>
    %23 = arith.addf %21, %22 : vector<8x64xf32>
    %24 = vector.extract_strided_slice %18 {offsets = [24, 0], sizes = [8, 64], strides = [1, 1]} : vector<72x64xf32> to vector<8x64xf32>
    %25 = arith.addf %23, %24 : vector<8x64xf32>
    %26 = vector.extract_strided_slice %18 {offsets = [32, 0], sizes = [8, 64], strides = [1, 1]} : vector<72x64xf32> to vector<8x64xf32>
    %27 = arith.addf %25, %26 : vector<8x64xf32>
    %28 = vector.extract_strided_slice %18 {offsets = [40, 0], sizes = [8, 64], strides = [1, 1]} : vector<72x64xf32> to vector<8x64xf32>
    %29 = arith.addf %27, %28 : vector<8x64xf32>
    %30 = vector.extract_strided_slice %18 {offsets = [48, 0], sizes = [8, 64], strides = [1, 1]} : vector<72x64xf32> to vector<8x64xf32>
    %31 = arith.addf %29, %30 : vector<8x64xf32>
    %32 = vector.extract_strided_slice %18 {offsets = [56, 0], sizes = [8, 64], strides = [1, 1]} : vector<72x64xf32> to vector<8x64xf32>
    %33 = arith.addf %31, %32 : vector<8x64xf32>
    %34 = vector.extract_strided_slice %18 {offsets = [64, 0], sizes = [8, 64], strides = [1, 1]} : vector<72x64xf32> to vector<8x64xf32>
    %35 = arith.addf %33, %34 : vector<8x64xf32>
    %cst_6 = arith.constant 0.000000e+00 : f32
    %36 = vector.broadcast %cst_6 : f32 to vector<2x128xf32>
    %37 = vector.extract_strided_slice %35 {offsets = [0, 0], sizes = [2, 64], strides = [1, 1]} : vector<8x64xf32> to vector<2x64xf32>
    %c0_7 = arith.constant 0 : index
    %c0_8 = arith.constant 0 : index
    %c0_9 = arith.constant 0 : index
    %38 = vector.load %arg4[%c0_7, %c0_8, %c0_9] : memref<4x64x128xf32, #tpu.memory_space<vmem>>, vector<1x64x128xf32>
    %39 = vector.shape_cast %38 : vector<1x64x128xf32> to vector<64x128xf32>
    %cst_10 = arith.constant dense<0.000000e+00> : vector<2x128xf32>
    %40 = tpu.matmul %37, %39, %cst_10 {dimension_numbers = #tpu.dot_dimension_numbers<[1], [0], [0], [1], [0, 0, 1, 1], [], []>} : vector<2x64xf32>, vector<64x128xf32>, vector<2x128xf32> -> vector<2x128xf32>
    %41 = arith.addf %36, %40 : vector<2x128xf32>
    %42 = vector.extract_strided_slice %35 {offsets = [2, 0], sizes = [2, 64], strides = [1, 1]} : vector<8x64xf32> to vector<2x64xf32>
    %c1 = arith.constant 1 : index
    %c0_11 = arith.constant 0 : index
    %c0_12 = arith.constant 0 : index
    %43 = vector.load %arg4[%c1, %c0_11, %c0_12] : memref<4x64x128xf32, #tpu.memory_space<vmem>>, vector<1x64x128xf32>
    %44 = vector.shape_cast %43 : vector<1x64x128xf32> to vector<64x128xf32>
    %cst_13 = arith.constant dense<0.000000e+00> : vector<2x128xf32>
    %45 = tpu.matmul %42, %44, %cst_13 {dimension_numbers = #tpu.dot_dimension_numbers<[1], [0], [0], [1], [0, 0, 1, 1], [], []>} : vector<2x64xf32>, vector<64x128xf32>, vector<2x128xf32> -> vector<2x128xf32>
    %46 = arith.addf %41, %45 : vector<2x128xf32>
    %47 = vector.extract_strided_slice %35 {offsets = [4, 0], sizes = [2, 64], strides = [1, 1]} : vector<8x64xf32> to vector<2x64xf32>
    %c2 = arith.constant 2 : index
    %c0_14 = arith.constant 0 : index
    %c0_15 = arith.constant 0 : index
    %48 = vector.load %arg4[%c2, %c0_14, %c0_15] : memref<4x64x128xf32, #tpu.memory_space<vmem>>, vector<1x64x128xf32>
    %49 = vector.shape_cast %48 : vector<1x64x128xf32> to vector<64x128xf32>
    %cst_16 = arith.constant dense<0.000000e+00> : vector<2x128xf32>
    %50 = tpu.matmul %47, %49, %cst_16 {dimension_numbers = #tpu.dot_dimension_numbers<[1], [0], [0], [1], [0, 0, 1, 1], [], []>} : vector<2x64xf32>, vector<64x128xf32>, vector<2x128xf32> -> vector<2x128xf32>
    %51 = arith.addf %46, %50 : vector<2x128xf32>
    %52 = vector.extract_strided_slice %35 {offsets = [6, 0], sizes = [2, 64], strides = [1, 1]} : vector<8x64xf32> to vector<2x64xf32>
    %c3 = arith.constant 3 : index
    %c0_17 = arith.constant 0 : index
    %c0_18 = arith.constant 0 : index
    %53 = vector.load %arg4[%c3, %c0_17, %c0_18] : memref<4x64x128xf32, #tpu.memory_space<vmem>>, vector<1x64x128xf32>
    %54 = vector.shape_cast %53 : vector<1x64x128xf32> to vector<64x128xf32>
    %cst_19 = arith.constant dense<0.000000e+00> : vector<2x128xf32>
    %55 = tpu.matmul %52, %54, %cst_19 {dimension_numbers = #tpu.dot_dimension_numbers<[1], [0], [0], [1], [0, 0, 1, 1], [], []>} : vector<2x64xf32>, vector<64x128xf32>, vector<2x128xf32> -> vector<2x128xf32>
    %56 = arith.addf %51, %55 : vector<2x128xf32>
    %c0_20 = arith.constant 0 : index
    %c0_21 = arith.constant 0 : index
    %57 = vector.load %arg5[%c0_20, %c0_21] : memref<1x128xf32, #tpu.memory_space<vmem>>, vector<1x128xf32>
    %58 = vector.broadcast %57 : vector<1x128xf32> to vector<2x128xf32>
    %59 = arith.addf %56, %58 : vector<2x128xf32>
    %c0_22 = arith.constant 0 : index
    %c0_23 = arith.constant 0 : index
    %60 = vector.load %arg6[%c0_22, %c0_23] : memref<2x128xf32, #tpu.memory_space<vmem>>, vector<2x128xf32>
    tpu.vector_store %arg6[%c0_22, %c0_23], %59 {strides = array<i32>} : memref<2x128xf32, #tpu.memory_space<vmem>>, vector<2x128xf32>,
    return
  }
  func.func @transform_0(%arg0: i32) -> (i32, i32) {
    %c0_i32 = arith.constant 0 : i32
    %c0_i32_0 = arith.constant 0 : i32
    %c0_i32_1 = arith.constant 0 : i32
    return %c0_i32, %c0_i32_0 : i32, i32
  }
  func.func @transform_1(%arg0: i32) -> (i32, i32) {
    %c0_i32 = arith.constant 0 : i32
    %c0_i32_0 = arith.constant 0 : i32
    %c0_i32_1 = arith.constant 0 : i32
    return %c0_i32, %c0_i32_0 : i32, i32
  }
  func.func @transform_2(%arg0: i32) -> (i32, i32) {
    %c0_i32 = arith.constant 0 : i32
    %c0_i32_0 = arith.constant 0 : i32
    %c0_i32_1 = arith.constant 0 : i32
    return %c0_i32, %c0_i32_0 : i32, i32
  }
  func.func @transform_3(%arg0: i32) -> (i32, i32, i32) {
    %c0_i32 = arith.constant 0 : i32
    %c0_i32_0 = arith.constant 0 : i32
    %c0_i32_1 = arith.constant 0 : i32
    %c0_i32_2 = arith.constant 0 : i32
    return %c0_i32, %c0_i32_0, %c0_i32_1 : i32, i32, i32
  }
  func.func @transform_4(%arg0: i32) -> (i32, i32) {
    %c0_i32 = arith.constant 0 : i32
    %c0_i32_0 = arith.constant 0 : i32
    %c0_i32_1 = arith.constant 0 : i32
    return %c0_i32, %c0_i32_0 : i32, i32
  }
  func.func @transform_5(%arg0: i32) -> (i32, i32) {
    %c0_i32 = arith.constant 0 : i32
    %c0_i32_0 = arith.constant 0 : i32
    %c0_i32_1 = arith.constant 0 : i32
    return %c0_i32, %c0_i32_0 : i32, i32
  }
}

</mosaic_0001>

<bundles_post_ra>
// kernel: tpu_custom_call.1
= control target key start
LH: loop header
LB: loop body
LE: loop exit
PB: predicated region body
PF: predicated region fallthrough
CT: control target
= control target key end

     0   :  { %10 = vsyncpa [#allocation3], 0  ;;  %s1403_s0 = inlined_call_operand.vmem [shape: bf16[432,24], index: 0, kind: input, shape index: {}]   ;;  %s1404_s1 = inlined_call_operand.hbm [shape: bf16[24,64], index: 1, kind: input, shape index: {}]   ;;  %s1405_s2 = inlined_call_operand.vmem [shape: f32[1,64], index: 2, kind: input, shape index: {}]   ;;  %s1406_s3 = inlined_call_operand.vmem [shape: f32[4,64,128], index: 3, kind: input, shape index: {}]   ;;  %s1407_s4 = inlined_call_operand.vmem [shape: f32[1,128], index: 4, kind: input, shape index: {}]   ;;  %s1408_s5 = inlined_call_operand.hbm [shape: f32[2,128], index: 5, kind: output, shape index: {}]  }
   0x1   :  { %11 = vsyncpa [#allocation4], 0  ;;  %s18_s20 = sshll.u32 %s1404_s1, 4  ;;  %s992_s21 = smov [#allocation2]   ;;  %s19_s20 = int_to_ptr.hbm [resolvable:$true] %s18_s20 }
   0x2   :  { %s20_s22 = sshll.u32 %s992_s21, 4  ;;  %s993_s23 = smov 64   ;;  %s21_s22 = int_to_ptr.vmem [resolvable:$true] %s20_s22 }
   0x3   :  { %s994_s24 = smov 4  }
   0x4   :  { %26 = dma.hbm_to_vmem [thread:$0]  %s19_s20, 192, %s21_s22, [#allocation3], %s993_s23, %s993_s23, %s994_s24  }
   0x5   :  { %988 = dma.done.wait [#allocation3], 192  }
   0x6   :  { %989 = vsyncadd [#allocation3], 4294967104  ;;  %v94_v0 = vld [vmem:[#allocation2 + $0x8] sm:$0xf]  ;;  %vm325_vm0 = vcmask 1043456   ;;  %v927_v4 = vld [vmem:[#allocation2] sm:$0xff] }
   0x7   :  { %v239_v1 = vunpack.c.l.b16 %v94_v0  ;;  %v900_v5 = vld [vmem:[%s1403_s0] sm:$0xff]  ;;  %vm243_vm1 = vcmask 195584   ;;  %v913_v7 = vld [vmem:[%s1403_s0 + $0x68] sm:$0xff]  ;;  %v914_v11 = vld [vmem:[%s1403_s0 + $0x70] sm:$0xff]  ;;  %vm599_vm2 = vcmask 523264   ;;  %s995_s11 = smov [#allocation5]  }
   0x8   :  { %v908_v6 = vld [vmem:[%s1403_s0 + $0x40] sm:$0xff]  ;;  %v901_v9 = vld [vmem:[%s1403_s0 + $0x8] sm:$0xff]  ;;  %v902_v13 = vld [vmem:[%s1403_s0 + $0x10] sm:$0xff]  ;;  %s721_s12 = sshll.u32 %s995_s11, 4  ;;  %s723_s15 = sshll.u32 %s1408_s5, 4  ;;  %s722_s12 = int_to_ptr.vmem [resolvable:$true] %s721_s12  ;;  %s724_s15 = int_to_ptr.hbm [resolvable:$true] %s723_s15 }
   0x9   :  { %v241_v2 = vpack.c.b16 %v239_v1, %v239_v1  ;;  %v920_v8 = vld [vmem:[%s1403_s0 + $0xa0] sm:$0xff]  ;;  %v909_v10 = vld [vmem:[%s1403_s0 + $0x48] sm:$0xff]  ;;  %v910_v14 = vld [vmem:[%s1403_s0 + $0x50] sm:$0xff] }
   0xa   :  { %v921_v12 = vld [vmem:[%s1403_s0 + $0xa8] sm:$0xff]  ;;  %v915_v15 = vld [vmem:[%s1403_s0 + $0x78] sm:$0xff]  ;;  %v922_v16 = vld [vmem:[%s1403_s0 + $0xb0] sm:$0xff] }
   0xb   :  { %v327_v3 = vsel %vm325_vm0, %v241_v2, 0  ;;  %v903_v17 = vld [vmem:[%s1403_s0 + $0x18] sm:$0xff]  ;;  %v916_v19 = vld [vmem:[%s1403_s0 + $0x80] sm:$0xff]  ;;  %v917_v23 = vld [vmem:[%s1403_s0 + $0x88] sm:$0xff] }
   0xc   :  { %335 = vmatpush.bf16.msra.mxu0 %v327_v3  ;;  %928 = vmatpush.bf16.msra.mxu1 %v327_v3  ;;  %v911_v18 = vld [vmem:[%s1403_s0 + $0x58] sm:$0xff]  ;;  %v904_v21 = vld [vmem:[%s1403_s0 + $0x20] sm:$0xff]  ;;  %v905_v25 = vld [vmem:[%s1403_s0 + $0x28] sm:$0xff] }
   0xd   :  { %929 = vmatpush.bf16.msra.mxu2 %v327_v3  ;;  %930 = vmatpush.bf16.msra.mxu3 %v327_v3  ;;  %v923_v20 = vld [vmem:[%s1403_s0 + $0xb8] sm:$0xff]  ;;  %v912_v22 = vld [vmem:[%s1403_s0 + $0x60] sm:$0xff]  ;;  %v918_v26 = vld [vmem:[%s1403_s0 + $0x90] sm:$0xff] }
   0xe   :  { %v924_v24 = vld [vmem:[%s1403_s0 + $0xc0] sm:$0xff]  ;;  %v925_v27 = vld [vmem:[%s1403_s0 + $0xc8] sm:$0xff]  ;;  %v906_v28 = vld [vmem:[%s1403_s0 + $0x30] sm:$0xff] }
   0xf   :  { %v919_v29 = vld [vmem:[%s1403_s0 + $0x98] sm:$0xff]  ;;  %v926_v30 = vld [vmem:[%s1403_s0 + $0xd0] sm:$0xff]  ;;  %v585_v50 = vld [vmem:[%s1406_s3 + $0x28] sm:$0xff] }
  0x10   :  { %336 = vmatpush.bf16.msra.mxu0 %v927_v4  ;;  %931 = vmatpush.bf16.msra.mxu1 %v927_v4  ;;  %v907_v31 = vld [vmem:[%s1403_s0 + $0x38] sm:$0xff]  ;;  %v586_v40 = vld [vmem:[%s1406_s3 + $0x30] sm:$0xff]  ;;  %v887_v51 = vld [vmem:[%s1406_s3 + $0xa8] sm:$0xff] }
  0x11   :  { %932 = vmatpush.bf16.msra.mxu2 %v927_v4  ;;  %933 = vmatpush.bf16.msra.mxu3 %v927_v4  ;;  %v587_v32 = vld [vmem:[%s1406_s3 + $0x38] sm:$0xff]  ;;  %v888_v41 = vld [vmem:[%s1406_s3 + $0xb0] sm:$0xff]  ;;  %v584_v61 = vld [vmem:[%s1406_s3 + $0x20] sm:$0xff] }
  0x12   :  { %v889_v35 = vld [vmem:[%s1406_s3 + $0xb8] sm:$0xff]  ;;  %v878_v0 = vld [vmem:[%s1406_s3 + $0x70] sm:$0xff]  ;;  %v886_v1 = vld [vmem:[%s1406_s3 + $0xa0] sm:$0xff] }
  0x13   :  { %845 = vmatmul.msk.bf16.vlgmr.msra.gmra.mxu0 %vm243_vm1, %v900_v5  ;;  %853 = vmatmul.msk.bf16.vlgmr.msra.gmra.mxu1 %vm243_vm1, %v908_v6  ;;  %v879_v56 = vld [vmem:[%s1406_s3 + $0x78] sm:$0xff]  ;;  %v1216_v4 = vld [vmem:[%s1405_s2] ss:$0 sm:$0xff] }
  0x14   :  { %858 = vmatmul.msk.bf16.vlgmr.msra.gmra.mxu2 %vm243_vm1, %v913_v7  ;;  %865 = vmatmul.msk.bf16.vlgmr.msra.gmra.mxu3 %vm243_vm1, %v920_v8  ;;  %v877_v8 = vld [vmem:[%s1406_s3 + $0x68] sm:$0xff] }
  0x15   :  { %632 = vmatpush.msrb.mxu2 %v587_v32  ;;  %664 = vmatpush.msrb.mxu3 %v889_v35 }
  0x16   :  { %610 = vmatpush.msrb.mxu1 %v879_v56 }
  0x17   :  { %633 = vmatpush.msrb.mxu2 %v586_v40  ;;  %665 = vmatpush.msrb.mxu3 %v888_v41 }
  0x18   :  { %611 = vmatpush.msrb.mxu1 %v878_v0 }
  0x19   :  { %634 = vmatpush.msrb.mxu2 %v585_v50  ;;  %666 = vmatpush.msrb.mxu3 %v887_v51 }
  0x1a   :  { %612 = vmatpush.msrb.mxu1 %v877_v8 }
  0x1b   :  { %635 = vmatpush.msrb.mxu2 %v584_v61  ;;  %667 = vmatpush.msrb.mxu3 %v886_v1 }
  0x23   :  { %846 = vmatmul.msk.bf16.gmra.mxu0 %vm243_vm1, %v901_v9  ;;  %854 = vmatmul.msk.bf16.gmra.mxu1 %vm243_vm1, %v909_v10  ;;  %v583_v9 = vld [vmem:[%s1406_s3 + $0x18] sm:$0xff] }
  0x24   :  { %859 = vmatmul.msk.bf16.gmra.mxu2 %vm243_vm1, %v914_v11  ;;  %866 = vmatmul.msk.bf16.gmra.mxu3 %vm243_vm1, %v921_v12 }
  0x25   :  { %636 = vmatpush.msrb.mxu2 %v583_v9 }
  0x33   :  { %847 = vmatmul.msk.bf16.gmra.mxu0 %vm243_vm1, %v902_v13  ;;  %855 = vmatmul.msk.bf16.gmra.mxu1 %vm243_vm1, %v910_v14 }
  0x34   :  { %860 = vmatmul.msk.bf16.gmra.mxu2 %vm243_vm1, %v915_v15  ;;  %867 = vmatmul.msk.bf16.gmra.mxu3 %vm243_vm1, %v922_v16  ;;  %v885_v16 = vld [vmem:[%s1406_s3 + $0x98] sm:$0xff] }
  0x35   :  { %668 = vmatpush.msrb.mxu3 %v885_v16 }
  0x43   :  { %848 = vmatmul.msk.bf16.gmra.mxu0 %vm243_vm1, %v903_v17  ;;  %856 = vmatmul.msk.bf16.gmra.mxu1 %vm243_vm1, %v911_v18 }
  0x44   :  { %861 = vmatmul.msk.bf16.gmra.mxu2 %vm243_vm1, %v916_v19  ;;  %868 = vmatmul.msk.bf16.gmra.mxu3 %vm243_vm1, %v923_v20  ;;  %v876_v19 = vld [vmem:[%s1406_s3 + $0x60] sm:$0xff] }
  0x45   :  { %613 = vmatpush.msrb.mxu1 %v876_v19 }
  0x53   :  { %849 = vmatmul.msk.bf16.gmra.mxu0 %vm243_vm1, %v904_v21  ;;  %857 = vmatmul.msk.bf16.gmra.mxu1 %vm243_vm1, %v912_v22 }
  0x54   :  { %862 = vmatmul.msk.bf16.gmra.mxu2 %vm243_vm1, %v917_v23  ;;  %869 = vmatmul.msk.bf16.gmra.mxu3 %vm243_vm1, %v924_v24 }
  0x63   :  { %850 = vmatmul.msk.bf16.gmra.mxu0 %vm243_vm1, %v905_v25 }
  0x64   :  { %863 = vmatmul.msk.bf16.gmra.mxu2 %vm243_vm1, %v918_v26  ;;  %870 = vmatmul.msk.bf16.gmra.mxu3 %vm243_vm1, %v925_v27 }
  0x73   :  { %851 = vmatmul.msk.bf16.gmra.mxu0 %vm243_vm1, %v906_v28 }
  0x74   :  { %864 = vmatmul.msk.bf16.gmra.mxu2 %vm243_vm1, %v919_v29  ;;  %871 = vmatmul.msk.bf16.gmra.mxu3 %vm243_vm1, %v926_v30 }
  0x83   :  { %852 = vmatmul.msk.bf16.gmra.mxu0 %vm243_vm1, %v907_v31 }
  0x90   :  { %v1140_v33 = vpop.f32.mrf.mxu0  ;;  %v378_v34 = vpop.f32.mrf.mxu1 }
  0x91   :  { %v379_v5 = vadd.f32 %v1216_v4, %v378_v34  ;;  %v339_v29 = vadd.f32 %v1216_v4, %v1140_v33 }
  0x93   :  { %v489_v13 = vmax.f32 %v379_v5, 0.0  ;;  %v473_v50 = vmax.f32 %v339_v29, 0.0 }
  0x97   :  { %v403_v36 = vpop.f32.mrf.mxu2  ;;  %v1145_v37 = vpop.f32.mrf.mxu3 }
  0x98   :  { %v1147_v38 = vpop.f32.mrf.mxu0  ;;  %v380_v39 = vpop.f32.mrf.mxu1  ;;  %v404_v22 = vadd.f32 %v1216_v4, %v403_v36  ;;  %v582_v36 = vld [vmem:[%s1406_s3 + $0x10] sm:$0xff] }
  0x99   :  { %v381_v17 = vadd.f32 %v1216_v4, %v380_v39  ;;  %v884_v39 = vld [vmem:[%s1406_s3 + $0x90] sm:$0xff]  ;;  %637 = vmatpush.msrb.mxu2 %v582_v36 }
  0x9a   :  { %v499_v27 = vmax.f32 %v404_v22, 0.0  ;;  %669 = vmatpush.msrb.mxu3 %v884_v39 }
  0x9b   :  { %v490_v25 = vmax.f32 %v381_v17, 0.0 }
  0x9f   :  { %v1155_v42 = vpop.f32.mrf.mxu2  ;;  %v1157_v43 = vpop.f32.mrf.mxu3 }
  0xa0   :  { %v1159_v44 = vpop.f32.mrf.mxu0  ;;  %v1161_v45 = vpop.f32.mrf.mxu1  ;;  %v406_v51 = vadd.f32 %v1216_v4, %v1155_v42 }
  0xa1   :  { %v384_v40 = vadd.f32 %v1216_v4, %v1161_v45 }
  0xa3   :  { %v491_v8 = vmax.f32 %v384_v40, 0.0 }
  0xa7   :  { %v1163_v46 = vpop.f32.mrf.mxu2  ;;  %v1165_v47 = vpop.f32.mrf.mxu3 }
  0xa8   :  { %v1167_v48 = vpop.f32.mrf.mxu0  ;;  %v1169_v49 = vpop.f32.mrf.mxu1 }
  0xaf   :  { %v1177_v52 = vpop.f32.mrf.mxu2  ;;  %v1179_v53 = vpop.f32.mrf.mxu3 }
  0xb0   :  { %v1181_v54 = vpop.f32.mrf.mxu0  ;;  %v1183_v55 = vpop.f32.mrf.mxu1  ;;  %v446_v56 = vadd.f32 %v1216_v4, %v1179_v53 }
  0xb7   :  { %v1188_v57 = vpop.f32.mrf.mxu2  ;;  %v1190_v58 = vpop.f32.mrf.mxu3 }
  0xb8   :  { %v1192_v59 = vpop.f32.mrf.mxu0  ;;  %v1194_v60 = vpop.f32.mrf.mxu1  ;;  %v449_v42 = vadd.f32 %v1216_v4, %v1190_v58  ;;  %v409_v58 = vadd.f32 %v1216_v4, %v1163_v46 }
  0xba   :  { %v501_v36 = vmax.f32 %v409_v58, 0.0 }
  0xbf   :  { %v1199_v62 = vpop.f32.mrf.mxu2  ;;  %v1201_v63 = vpop.f32.mrf.mxu3 }
  0xc0   :  { %v1209_v2 = vpop.f32.mrf.mxu0  ;;  %v1211_v3 = vpop.f32.mrf.mxu1 }
  0xc7   :  { %v1219_v6 = vpop.f32.mrf.mxu2  ;;  %v1221_v7 = vpop.f32.mrf.mxu3 }
  0xc8   :  { %v355_v10 = vpop.f32.mrf.mxu0  ;;  %v1229_v11 = vpop.f32.mrf.mxu1 }
  0xc9   :  { %v356_v12 = vadd.f32 %v1216_v4, %v355_v10  ;;  %v341_v10 = vadd.f32 %v1216_v4, %v1147_v38 }
  0xcb   :  { %v480_v14 = vmax.f32 %v356_v12, 0.0  ;;  %v500_v12 = vmax.f32 %v406_v51, 0.0 }
  0xcd   :  { %v534_v15 = vmax.f32 %v480_v14, %v489_v13  ;;  %v516_v13 = vmax.f32 %v446_v56, 0.0  ;;  %v411_v56 = vadd.f32 %v1216_v4, %v1177_v52  ;;  %v883_v52 = vld [vmem:[%s1406_s3 + $0x88] sm:$0xff] }
  0xce   :  { %670 = vmatpush.msrb.mxu3 %v883_v52  ;;  %v895_v52 = vld [vmem:[%s1406_s3 + $0xe0] sm:$0xff] }
  0xcf   :  { %v1236_v18 = vpop.f32.mrf.mxu2  ;;  %v1245_v24 = vpop.f32.mrf.mxu3 }
  0xd0   :  { %v358_v20 = vpop.f32.mrf.mxu0  ;;  %v1241_v21 = vpop.f32.mrf.mxu1 }
  0xd1   :  { %v359_v23 = vadd.f32 %v1216_v4, %v358_v20  ;;  %v875_v20 = vld [vmem:[%s1406_s3 + $0x58] sm:$0xff] }
  0xd2   :  { %614 = vmatpush.msrb.mxu1 %v875_v20 }
  0xd3   :  { %v481_v26 = vmax.f32 %v359_v23, 0.0 }
  0xd5   :  { %v535_v28 = vmax.f32 %v481_v26, %v490_v25  ;;  %v474_v26 = vmax.f32 %v341_v10, 0.0 }
  0xd7   :  { %v423_v30 = vpop.f32.mrf.mxu2  ;;  %v544_v31 = vmax.f32 %v535_v28, %v499_v27  ;;  %v1264_v5 = vpop.f32.mrf.mxu3  ;;  %v517_v28 = vmax.f32 %v449_v42, 0.0  ;;  %v391_v42 = vadd.f32 %v1216_v4, %v1194_v60  ;;  %v873_v60 = vld [vmem:[%s1406_s3 + $0x48] sm:$0xff] }
  0xd8   :  { %v424_v32 = vadd.f32 %v1216_v4, %v423_v30  ;;  %v360_v34 = vpop.f32.mrf.mxu0  ;;  %v400_v35 = vpop.f32.mrf.mxu1 }
  0xd9   :  { %v361_v41 = vadd.f32 %v1216_v4, %v360_v34  ;;  %v401_v33 = vadd.f32 %v1216_v4, %v400_v35 }
  0xda   :  { %v507_v61 = vmax.f32 %v424_v32, 0.0 }
  0xdb   :  { %v482_v0 = vmax.f32 %v361_v41, 0.0  ;;  %v498_v1 = vmax.f32 %v401_v33, 0.0  ;;  %v389_v33 = vadd.f32 %v1216_v4, %v1183_v55  ;;  %v874_v55 = vld [vmem:[%s1406_s3 + $0x50] sm:$0xff] }
  0xdc   :  { %615 = vmatpush.msrb.mxu1 %v874_v55 }
  0xdd   :  { %v527_v45 = vmax.f32 %v473_v50, %v482_v0  ;;  %v543_v9 = vmax.f32 %v534_v15, %v498_v1  ;;  %v386_v15 = vadd.f32 %v1216_v4, %v1169_v49  ;;  %v344_v49 = vadd.f32 %v1216_v4, %v1159_v44 }
  0xde   :  { %v493_v0 = vmax.f32 %v389_v33, 0.0  ;;  %616 = vmatpush.msrb.mxu1 %v873_v60  ;;  %v456_v33 = vadd.f32 %v1216_v4, %v1245_v24  ;;  %v896_v24 = vld [vmem:[%s1406_s3 + $0xe8] sm:$0xff] }
  0xdf   :  { %v536_v14 = vmax.f32 %v527_v45, %v491_v8  ;;  %v552_v16 = vmax.f32 %v543_v9, %v507_v61  ;;  %v425_v17 = vpop.f32.mrf.mxu2  ;;  %v492_v30 = vmax.f32 %v386_v15, 0.0  ;;  %v1281_v34 = vpop.f32.mrf.mxu3  ;;  %v475_v51 = vmax.f32 %v344_v49, 0.0  ;;  %v898_v49 = vld [vmem:[%s1406_s3 + $0xf8] sm:$0xff] }
  0xe0   :  { %v426_v53 = vadd.f32 %v1216_v4, %v425_v17  ;;  %v363_v19 = vpop.f32.mrf.mxu0  ;;  %v346_v8 = vadd.f32 %v1216_v4, %v1167_v48  ;;  %v502_v45 = vmax.f32 %v411_v56, 0.0  ;;  %v454_v48 = vadd.f32 %v1216_v4, %v1221_v7 }
  0xe1   :  { %v364_v38 = vadd.f32 %v1216_v4, %v363_v19  ;;  %v545_v22 = vmax.f32 %v536_v14, %v500_v12  ;;  %v1277_v23 = vmax.f32 %v552_v16, %v516_v13  ;;  %v581_v12 = vld [vmem:[%s1406_s3 + $0x8] sm:$0xff]  ;;  %v451_v13 = vadd.f32 %v1216_v4, %v1201_v63 }
  0xe2   :  { %v508_v25 = vmax.f32 %v426_v53, 0.0  ;;  %638 = vmatpush.msrb.mxu2 %v581_v12  ;;  %v476_v63 = vmax.f32 %v346_v8, 0.0  ;;  %v414_v7 = vadd.f32 %v1216_v4, %v1188_v57  ;;  %v394_v56 = vadd.f32 %v1216_v4, %v1211_v3 }
  0xe3   :  { %v483_v27 = vmax.f32 %v364_v38, 0.0  ;;  %v416_v8 = vadd.f32 %v1216_v4, %v1199_v62  ;;  %v439_v3 = vadd.f32 %v1216_v4, %v1145_v37  ;;  %v459_v37 = vadd.f32 %v1216_v4, %v1264_v5 }
  0xe4   :  { %v553_v29 = vmax.f32 %v544_v31, %v508_v25  ;;  %v518_v25 = vmax.f32 %v451_v13, 0.0  ;;  %v495_v55 = vmax.f32 %v394_v56, 0.0 }
  0xe5   :  { %v528_v32 = vmax.f32 %v474_v26, %v483_v27  ;;  %v519_v26 = vmax.f32 %v454_v48, 0.0  ;;  %v494_v27 = vmax.f32 %v391_v42, 0.0  ;;  %v351_v48 = vadd.f32 %v1216_v4, %v1192_v59  ;;  %v894_v42 = vld [vmem:[%s1406_s3 + $0xd8] sm:$0xff] }
  0xe6   :  { %v1283_v35 = vmax.f32 %v553_v29, %v517_v28  ;;  %v580_v29 = vld [vmem:[%s1406_s3] sm:$0xff]  ;;  %v513_v59 = vmax.f32 %v439_v3, 0.0 }
  0xe7   :  { %v537_v39 = vmax.f32 %v528_v32, %v492_v30  ;;  %v428_v40 = vpop.f32.mrf.mxu2  ;;  %v1308_v14 = vpop.f32.mrf.mxu3  ;;  %639 = vmatpush.msrb.mxu2 %v580_v29  ;;  %v872_v32 = vld [vmem:[%s1406_s3 + $0x40] sm:$0xff] }
  0xe8   :  { %v365_v41 = vpop.f32.mrf.mxu0  ;;  %v429_v31 = vadd.f32 %v1216_v4, %v428_v40  ;;  %617 = vmatpush.msrb.mxu1 %v872_v32 }
  0xe9   :  { %v366_v46 = vadd.f32 %v1216_v4, %v365_v41  ;;  %v546_v50 = vmax.f32 %v537_v39, %v501_v36  ;;  %v349_v36 = vadd.f32 %v1216_v4, %v1181_v54  ;;  %v503_v39 = vmax.f32 %v414_v7, 0.0 }
  0xea   :  { %v509_v44 = vmax.f32 %v429_v31, 0.0  ;;  %697 = vmatpush.msra.mxu1 %v898_v49 }
  0xeb   :  { %v484_v61 = vmax.f32 %v366_v46, 0.0 }
  0xec   :  { %v554_v20 = vmax.f32 %v545_v22, %v509_v44  ;;  %v882_v22 = vld [vmem:[%s1406_s3 + $0x80] sm:$0xff]  ;;  %v477_v44 = vmax.f32 %v349_v36, 0.0 }
  0xed   :  { %v529_v1 = vmax.f32 %v475_v51, %v484_v61  ;;  %671 = vmatpush.msrb.mxu3 %v882_v22  ;;  %v897_v51 = vld [vmem:[%s1406_s3 + $0xf0] sm:$0xff] }
  0xee   :  { %v563_v30 = vmax.f32 %v554_v20, %v518_v25  ;;  %698 = vmatpush.msra.mxu1 %v897_v51  ;;  %v461_v25 = vadd.f32 %v1216_v4, %v1281_v34  ;;  %v441_v34 = vadd.f32 %v1216_v4, %v1157_v43  ;;  %v399_v43 = vadd.f32 %v1216_v4, %v1241_v21 }
  0xef   :  { %v538_v9 = vmax.f32 %v529_v1, %v493_v0  ;;  %v430_v10 = vpop.f32.mrf.mxu2  ;;  %v1342_v0 = vpop.f32.mrf.mxu3 }
  0xf0   :  { %v431_v16 = vadd.f32 %v1216_v4, %v430_v10  ;;  %v368_v17 = vpop.f32.mrf.mxu0  ;;  %699 = vmatpush.msra.mxu1 %v896_v24  ;;  %v522_v49 = vmax.f32 %v461_v25, 0.0  ;;  %v466_v21 = vadd.f32 %v1216_v4, %v1342_v0 }
  0xf1   :  { %v369_v53 = vadd.f32 %v1216_v4, %v368_v17  ;;  %v547_v19 = vmax.f32 %v538_v9, %v502_v45  ;;  %v520_v9 = vmax.f32 %v456_v33, 0.0 }
  0xf2   :  { %v510_v15 = vmax.f32 %v431_v16, 0.0  ;;  %v504_v16 = vmax.f32 %v416_v8, 0.0  ;;  %700 = vmatpush.msra.mxu1 %v895_v52  ;;  %v497_v8 = vmax.f32 %v399_v43, 0.0 }
  0xf3   :  { %v485_v38 = vmax.f32 %v369_v53, 0.0 }
  0xf4   :  { %v555_v58 = vmax.f32 %v546_v50, %v510_v15  ;;  %v893_v15 = vld [vmem:[%s1406_s3 + $0xd0] sm:$0xff]  ;;  %701 = vmatpush.msra.mxu1 %v894_v42 }
  0xf5   :  { %v530_v28 = vmax.f32 %v476_v63, %v485_v38  ;;  %v396_v63 = vadd.f32 %v1216_v4, %v1229_v11  ;;  %v521_v11 = vmax.f32 %v459_v37, 0.0 }
  0xf6   :  { %v564_v57 = vmax.f32 %v555_v58, %v519_v26  ;;  %v892_v26 = vld [vmem:[%s1406_s3 + $0xc8] sm:$0xff]  ;;  %v478_v58 = vmax.f32 %v351_v48, 0.0  ;;  %702 = vmatpush.msra.mxu1 %v893_v15 }
  0xf7   :  { %v539_v40 = vmax.f32 %v530_v28, %v494_v27  ;;  %v433_v41 = vpop.f32.mrf.mxu2  ;;  %v419_v27 = vadd.f32 %v1216_v4, %v1219_v6  ;;  %v468_v29 = vpop.f32.mrf.mxu3  ;;  %v354_v6 = vadd.f32 %v1216_v4, %v1209_v2 }
  0xf8   :  { %v572_v46 = vadd.f32 %v564_v57, %v563_v30  ;;  %v434_v50 = vadd.f32 %v1216_v4, %v433_v41  ;;  %v370_v31 = vpop.f32.mrf.mxu0  ;;  %v891_v30 = vld [vmem:[%s1406_s3 + $0xc0] sm:$0xff]  ;;  %v496_v57 = vmax.f32 %v396_v63, 0.0  ;;  %703 = vmatpush.msra.mxu1 %v892_v26 }
  0xf9   :  { %v371_v54 = vadd.f32 %v1216_v4, %v370_v31  ;;  %v548_v61 = vmax.f32 %v539_v40, %v503_v39  ;;  %v505_v39 = vmax.f32 %v419_v27, 0.0  ;;  %v464_v40 = vadd.f32 %v1216_v4, %v1308_v14 }
  0xfa   :  { %v511_v1 = vmax.f32 %v434_v50, 0.0  ;;  %704 = vmatpush.msra.mxu1 %v891_v30  ;;  %v514_v31 = vmax.f32 %v441_v34, 0.0 }
  0xfb   :  { %v486_v45 = vmax.f32 %v371_v54, 0.0  ;;  %v421_v54 = vadd.f32 %v1216_v4, %v1236_v18 }
  0xfc   :  { %v556_v10 = vmax.f32 %v547_v19, %v511_v1  ;;  %v523_v1 = vmax.f32 %v464_v40, 0.0 }
  0xfd   :  { %v531_v12 = vmax.f32 %v477_v44, %v486_v45  ;;  %v444_v44 = vadd.f32 %v1216_v4, %v1165_v47 }
  0xfe   :  { %v565_v13 = vmax.f32 %v556_v10, %v520_v9  ;;  %v506_v10 = vmax.f32 %v421_v54, 0.0 }
  0xff   :  { %v540_v62 = vmax.f32 %v531_v12, %v495_v55  ;;  %v435_v17 = vpop.f32.mrf.mxu2  ;;  %v470_v3 = vpop.f32.mrf.mxu3  ;;  %v469_v55 = vadd.f32 %v1216_v4, %v468_v29  ;;  %v515_v52 = vmax.f32 %v444_v44, 0.0 }
 0x100   :  { %v573_v53 = vadd.f32 %v572_v46, %v565_v13  ;;  %v436_v19 = vadd.f32 %v1216_v4, %v435_v17  ;;  %v373_v20 = vpop.f32.mrf.mxu0  ;;  %v471_v13 = vadd.f32 %v1216_v4, %v470_v3 }
 0x101   :  { %v549_v7 = vmax.f32 %v540_v62, %v504_v16  ;;  %v374_v38 = vadd.f32 %v1216_v4, %v373_v20  ;;  %v524_v16 = vmax.f32 %v466_v21, 0.0  ;;  %v525_v62 = vmax.f32 %v469_v55, 0.0 }
 0x102   :  { %v512_v5 = vmax.f32 %v436_v19, 0.0  ;;  %v526_v47 = vmax.f32 %v471_v13, 0.0 }
 0x103   :  { %v558_v28 = vmax.f32 %v549_v7, %v513_v59  ;;  %v487_v60 = vmax.f32 %v374_v38, 0.0  ;;  %v570_v37 = vmax.f32 %v1277_v23, %v525_v62  ;;  %v939_v23 = vld [vmem:[%s1407_s4] ss:$0 sm:$0xff] }
 0x104   :  { %v557_v22 = vmax.f32 %v548_v61, %v512_v5  ;;  %v479_v61 = vmax.f32 %v354_v6, 0.0  ;;  %v571_v19 = vmax.f32 %v1283_v35, %v526_v47 }
 0x105   :  { %v532_v32 = vmax.f32 %v478_v58, %v487_v60  ;;  %v567_v33 = vmax.f32 %v558_v28, %v522_v49 }
 0x106   :  { %v566_v36 = vmax.f32 %v557_v22, %v521_v11 }
 0x107   :  { %v541_v41 = vmax.f32 %v532_v32, %v496_v57 }
 0x108   :  { %v574_v46 = vadd.f32 %v573_v53, %v566_v36  ;;  %v375_v50 = vpop.f32.mrf.mxu0 }
 0x109   :  { %v550_v51 = vmax.f32 %v541_v41, %v505_v39  ;;  %v376_v56 = vadd.f32 %v1216_v4, %v375_v50 }
 0x10a   :  { %v575_v2 = vadd.f32 %v574_v46, %v567_v33 }
 0x10b   :  { %v559_v24 = vmax.f32 %v550_v51, %v514_v31  ;;  %v488_v14 = vmax.f32 %v376_v56, 0.0 }
 0x10d   :  { %v568_v45 = vmax.f32 %v559_v24, %v523_v1  ;;  %v533_v9 = vmax.f32 %v479_v61, %v488_v14 }
 0x10f   :  { %v576_v12 = vadd.f32 %v575_v2, %v568_v45  ;;  %v542_v18 = vmax.f32 %v533_v9, %v497_v8 }
 0x111   :  { %v551_v48 = vmax.f32 %v542_v18, %v506_v10 }
 0x113   :  { %v560_v17 = vmax.f32 %v551_v48, %v515_v52 }
 0x115   :  { %v569_v42 = vmax.f32 %v560_v17, %v524_v16 }
 0x117   :  { %v577_v53 = vadd.f32 %v576_v12, %v569_v42 }
 0x119   :  { %v578_v20 = vadd.f32 %v577_v53, %v570_v37 }
 0x11b   :  { %v579_v0 = vadd.f32 %v578_v20, %v571_v19 }
 0x11d   :  { %881 = vmatmul.msk.f32.vlgmr.msrb.gmra.mxu2 %vm599_vm2, %v579_v0  ;;  %v598_v15 = vrot.slane %v579_v0, 2  ;;  %v653_v59 = vrot.slane %v579_v0, 4  ;;  %v686_v4 = vrot.slane %v579_v0, 6 }
 0x11f   :  { %880 = vmatmul.msk.f32.vlgmr.msrb.gmra.mxu1 %vm599_vm2, %v598_v15  ;;  %890 = vmatmul.msk.f32.vlgmr.msrb.gmra.mxu3 %vm599_vm2, %v653_v59 }
 0x127   :  { %899 = vmatmul.msk.f32.vlgmr.msra.gmra.mxu1 %vm599_vm2, %v686_v4 }
 0x19c   :  { %v619_v63 = vpop.f32.mrf.mxu1 }
 0x1a0   :  { %v641_v7 = vpop.f32.mrf.mxu2 }
 0x1a1   :  { %v642_v38 = vadd.f32 %v641_v7, %v619_v63 }
 0x1a2   :  { %v673_v25 = vpop.f32.mrf.mxu3 }
 0x1a3   :  { %v676_v5 = vadd.f32 %v673_v25, %v642_v38 }
 0x1a4   :  { %v706_v35 = vpop.f32.mrf.mxu1 }
 0x1a5   :  { %v709_v26 = vadd.f32 %v706_v35, %v676_v5 }
 0x1a7   :  { %v714_v58 = vadd.f32 %v939_v23, %v709_v26 }
 0x1a9   :  { %715 = vst [vmem:[#allocation5] sm:$0x3] %v714_v58 }
 0x1aa   :  { %726 = dma.vmem_to_hbm [thread:$0]  %s722_s12, 32, %s724_s15, [#allocation4]  }
 0x1ab   :  { %990 = dma.done.wait [#allocation4], 32  }
 0x1ac   :  { %991 = vsyncadd [#allocation4], 4294967264 }
 0x1ad   :  { %731 = vsyncpa [#allocation3], 1 }
 0x1ae   :  { %732 = vsyncpa [#allocation4], 1 }

</bundles_post_ra>
